<compile_context>
chip_gen: v7x
topology: tpu7x:2x2x1
jax: 0.10.0
libtpu: 0.0.40
codegen_flags: <defaults>
</compile_context>

<pallas_src>
import jax
import jax.numpy as jnp
from jax.experimental import pallas as pl
from jax.experimental.pallas import tpu as pltpu

_LANE = 128            # dense vreg lane width
_MAX_BLOCK_ROWS = 512  # 512*128*4B = 256 KiB per f32 buffer; double-buffered x3
                       # operands stays far under 32 MiB scoped / 64 MiB v7x VMEM


def _add_kernel(a_ref, b_ref, o_ref):
    # Whole tile resident in VMEM; single dense VPU elementwise add.
    o_ref[...] = a_ref[...] + b_ref[...]


def pallas_add(a: jax.Array, b: jax.Array) -> jax.Array:
    assert a.shape == b.shape and a.dtype == b.dtype
    orig_shape = a.shape
    total = 1
    for d in orig_shape:
        total *= d

    # Lane-dense layout: (rows, 128). For (1,640,7,7): 31360 = 245 x 128, pad=0.
    rows_needed = pl.cdiv(total, _LANE)
    block_rows = rows_needed if rows_needed <= _MAX_BLOCK_ROWS else _MAX_BLOCK_ROWS
    rows = pl.cdiv(rows_needed, block_rows) * block_rows
    padded_total = rows * _LANE
    pad = padded_total - total

    a_flat = a.reshape(-1)
    b_flat = b.reshape(-1)
    if pad:
        a_flat = jnp.pad(a_flat, (0, pad))
        b_flat = jnp.pad(b_flat, (0, pad))
    a2 = a_flat.reshape(rows, _LANE)
    b2 = b_flat.reshape(rows, _LANE)

    grid = (rows // block_rows,)
    spec = pl.BlockSpec((block_rows, _LANE), lambda i: (i, 0))

    out2 = pl.pallas_call(
        _add_kernel,
        out_shape=jax.ShapeDtypeStruct((rows, _LANE), a.dtype),
        grid=grid,
        in_specs=[spec, spec],
        out_specs=spec,
        # Residual add may write in place over x1020 (XLA inserts a copy if the
        # source buffer is still live elsewhere) -> less allocator pressure.
        input_output_aliases={0: 0},
        compiler_params=pltpu.CompilerParams(
            dimension_semantics=("parallel",),  # shard row-grid over both TCs on v7x
        ),
    )(a2, b2)

    out_flat = out2.reshape(-1)
    if pad:
        out_flat = out_flat[:total]
    return out_flat.reshape(orig_shape)


if __name__ == "__main__":
    key = jax.random.PRNGKey(0)
    k1, k2 = jax.random.split(key)
    # Shapes from the module's forward: two equal NCHW tensors.
    shape = (1, 640, 7, 7)
    x1020 = jax.random.normal(k1, shape, dtype=jnp.float32)
    x1005 = jax.random.normal(k2, shape, dtype=jnp.float32)

    out = pallas_add(x1020, x1005)
    jax.block_until_ready(out)

    # Correctness check against plain JAX reference (exact elementwise add).
    ref = x1020 + x1005
    assert out.shape == shape and out.dtype == jnp.float32
    assert jnp.allclose(out, ref, atol=1e-6, rtol=1e-6)
    print("KERNEL_OK")
</pallas_src>

<mosaic_0001>
module attributes {stable_mosaic.version = 11 : i64} {
  func.func @_add_kernel(%arg0: i32, %arg1: memref<245x128xf32, #tpu.memory_space<vmem>>, %arg2: memref<245x128xf32, #tpu.memory_space<vmem>>, %arg3: memref<245x128xf32, #tpu.memory_space<vmem>>) attributes {dimension_semantics = [#tpu.dimension_semantics<parallel>], iteration_bounds = array<i64: 1>, scalar_prefetch = 0 : i64, scratch_operands = 0 : i64, tpu.core_type = #tpu.core_type<tc>, window_params = [{transform_indices = @transform_0, window_bounds = array<i64: 245, 128>}, {transform_indices = @transform_1, window_bounds = array<i64: 245, 128>}, {transform_indices = @transform_2, window_bounds = array<i64: 245, 128>}]} {
    %c0 = arith.constant 0 : index
    %c0_0 = arith.constant 0 : index
    %0 = vector.load %arg1[%c0, %c0_0] : memref<245x128xf32, #tpu.memory_space<vmem>>, vector<245x128xf32>
    %c0_1 = arith.constant 0 : index
    %c0_2 = arith.constant 0 : index
    %1 = vector.load %arg2[%c0_1, %c0_2] : memref<245x128xf32, #tpu.memory_space<vmem>>, vector<245x128xf32>
    %2 = arith.addf %0, %1 : vector<245x128xf32>
    %c0_3 = arith.constant 0 : index
    %c0_4 = arith.constant 0 : index
    %3 = vector.load %arg3[%c0_3, %c0_4] : memref<245x128xf32, #tpu.memory_space<vmem>>, vector<245x128xf32>
    tpu.vector_store %arg3[%c0_3, %c0_4], %2 {strides = array<i32>} : memref<245x128xf32, #tpu.memory_space<vmem>>, vector<245x128xf32>,
    return
  }
  func.func @transform_0(%arg0: i32) -> (i32, i32) {
    %c0_i32 = arith.constant 0 : i32
    %c0_i32_0 = arith.constant 0 : i32
    return %arg0, %c0_i32 : i32, i32
  }
  func.func @transform_1(%arg0: i32) -> (i32, i32) {
    %c0_i32 = arith.constant 0 : i32
    %c0_i32_0 = arith.constant 0 : i32
    return %arg0, %c0_i32 : i32, i32
  }
  func.func @transform_2(%arg0: i32) -> (i32, i32) {
    %c0_i32 = arith.constant 0 : i32
    %c0_i32_0 = arith.constant 0 : i32
    return %arg0, %c0_i32 : i32, i32
  }
}

</mosaic_0001>

<bundles_post_ra>
// kernel: tpu_custom_call.1
= control target key start
LH: loop header
LB: loop body
LE: loop exit
PB: predicated region body
PF: predicated region fallthrough
CT: control target
= control target key end

     0   :  { %7 = vsyncpa [#allocation3], 0  ;;  %s361_s0 = inlined_call_operand.hbm [shape: f32[245,128], index: 0, kind: input, shape index: {}, may-alias: {0,2}]   ;;  %s362_s1 = inlined_call_operand.vmem [shape: f32[245,128], index: 1, kind: input, shape index: {}]   ;;  %s363_s2 = inlined_call_operand.hbm [shape: f32[245,128], index: 2, kind: output, shape index: {}, may-alias: {0,2}]  }
   0x1   :  { %8 = vsyncpa [#allocation4], 0  ;;  %s219_s9 = smov [#allocation2]   ;;  %s171_s13 = scalar_lea.hbm %s361_s0, 3968 }
   0x2   :  { %s14_s10 = sshll.u32 %s219_s9, 4  ;;  %p172_p0 = scmp.ne.s32.totalorder %s361_s0, %s171_s13  ;;  %s15_s10 = int_to_ptr.vmem [resolvable:$true] %s14_s10 }
   0x3   :  { %p175_p1 = scmp.lt.u32.totalorder %s171_s13, %s361_s0 }
   0x5   :  { %p177_p2 = pnand %p175_p1, %p172_p0 }
   0x7   :  { %180 = shalt.err (!%p177_p2)
}
   0x8   :  { %s181_s18 = scalar_lea.vmem %s15_s10, 3968  ;;  %p186_p4 = scmp.lt.s32.totalorder %s15_s10, %s15_s10 }
   0x9   :  { %p182_p3 = scmp.ne.s32.totalorder %s15_s10, %s181_s18  ;;  %p187_p5 = scmp.lt.s32.totalorder %s181_s18, %s181_s18 }
   0xb   :  { %p188_p6 = por %p187_p5, %p186_p4 }
   0xd   :  { %p189_p7 = pnand %p188_p6, %p182_p3 }
   0xf   :  { %192 = shalt.err (!%p189_p7)
}
  0x10   :  { %s220_s19 = smov 128   ;;  %s221_s20 = smov 8  }
  0x11   :  { %20 = dma.hbm_to_vmem [thread:$0]  %s361_s0, 3968, %s15_s10, [#allocation3], %s220_s19, %s220_s19, %s221_s20  }
  0x12   :  { %215 = dma.done.wait [#allocation3], 3968  }
  0x13   :  { %216 = vsyncadd [#allocation3], 4294963328  ;;  %v26_v0 = vld [vmem:[#allocation2] sm:$0xff]  ;;  %v27_v2 = vld [vmem:[#allocation2 + $0x8] sm:$0xff]  ;;  %s222_s25 = smov [#allocation5]  }
  0x14   :  { %v57_v1 = vld [vmem:[%s362_s1] sm:$0xff]  ;;  %v58_v4 = vld [vmem:[%s362_s1 + $0x8] sm:$0xff]  ;;  %v28_v5 = vld [vmem:[#allocation2 + $0x10] sm:$0xff]  ;;  %s155_s26 = sshll.u32 %s222_s25, 4  ;;  %s156_s26 = int_to_ptr.vmem [resolvable:$true] %s155_s26 }
  0x15   :  { %v88_v3 = vadd.f32 %v57_v1, %v26_v0  ;;  %v59_v6 = vld [vmem:[%s362_s1 + $0x10] sm:$0xff]  ;;  %v89_v7 = vadd.f32 %v58_v4, %v27_v2  ;;  %v29_v9 = vld [vmem:[#allocation2 + $0x18] sm:$0xff]  ;;  %v30_v11 = vld [vmem:[#allocation2 + $0x20] sm:$0xff]  ;;  %s193_s4 = scalar_lea.vmem %s156_s26, 3968  ;;  %p198_p9 = scmp.lt.s32.totalorder %s156_s26, %s156_s26 }
  0x16   :  { %v90_v8 = vadd.f32 %v59_v6, %v28_v5  ;;  %v60_v10 = vld [vmem:[%s362_s1 + $0x18] sm:$0xff]  ;;  %v61_v13 = vld [vmem:[%s362_s1 + $0x20] sm:$0xff]  ;;  %v31_v14 = vld [vmem:[#allocation2 + $0x28] sm:$0xff]  ;;  %p194_p8 = scmp.ne.s32.totalorder %s156_s26, %s193_s4  ;;  %p199_p10 = scmp.lt.s32.totalorder %s193_s4, %s193_s4 }
  0x17   :  { %119 = vst [vmem:[#allocation5] sm:$0xff] %v88_v3  ;;  %v91_v12 = vadd.f32 %v60_v10, %v29_v9  ;;  %v62_v15 = vld [vmem:[%s362_s1 + $0x28] sm:$0xff]  ;;  %120 = vst [vmem:[#allocation5 + $0x8] sm:$0xff] %v89_v7  ;;  %v92_v16 = vadd.f32 %v61_v13, %v30_v11  ;;  %v32_v18 = vld [vmem:[#allocation2 + $0x30] sm:$0xff] }
  0x18   :  { %121 = vst [vmem:[#allocation5 + $0x10] sm:$0xff] %v90_v8  ;;  %v93_v17 = vadd.f32 %v62_v15, %v31_v14  ;;  %v63_v19 = vld [vmem:[%s362_s1 + $0x30] sm:$0xff]  ;;  %v33_v20 = vld [vmem:[#allocation2 + $0x38] sm:$0xff]  ;;  %v34_v23 = vld [vmem:[#allocation2 + $0x40] sm:$0xff]  ;;  %p200_p11 = por %p199_p10, %p198_p9 }
  0x19   :  { %122 = vst [vmem:[#allocation5 + $0x18] sm:$0xff] %v91_v12  ;;  %v94_v21 = vadd.f32 %v63_v19, %v32_v18  ;;  %v64_v22 = vld [vmem:[%s362_s1 + $0x38] sm:$0xff]  ;;  %v65_v24 = vld [vmem:[%s362_s1 + $0x40] sm:$0xff]  ;;  %123 = vst [vmem:[#allocation5 + $0x20] sm:$0xff] %v92_v16 }
  0x1a   :  { %124 = vst [vmem:[#allocation5 + $0x28] sm:$0xff] %v93_v17  ;;  %v95_v25 = vadd.f32 %v64_v22, %v33_v20  ;;  %v96_v26 = vadd.f32 %v65_v24, %v34_v23  ;;  %v35_v27 = vld [vmem:[#allocation2 + $0x48] sm:$0xff]  ;;  %v36_v29 = vld [vmem:[#allocation2 + $0x50] sm:$0xff]  ;;  %v37_v32 = vld [vmem:[#allocation2 + $0x58] sm:$0xff]  ;;  %p201_p12 = pnand %p200_p11, %p194_p8 }
  0x1b   :  { %v66_v28 = vld [vmem:[%s362_s1 + $0x48] sm:$0xff]  ;;  %125 = vst [vmem:[#allocation5 + $0x30] sm:$0xff] %v94_v21  ;;  %v67_v31 = vld [vmem:[%s362_s1 + $0x50] sm:$0xff]  ;;  %v68_v33 = vld [vmem:[%s362_s1 + $0x58] sm:$0xff] }
  0x1c   :  { %v97_v30 = vadd.f32 %v66_v28, %v35_v27  ;;  %126 = vst [vmem:[#allocation5 + $0x38] sm:$0xff] %v95_v25  ;;  %127 = vst [vmem:[#allocation5 + $0x40] sm:$0xff] %v96_v26  ;;  %v98_v34 = vadd.f32 %v67_v31, %v36_v29  ;;  %v99_v35 = vadd.f32 %v68_v33, %v37_v32  ;;  %v38_v36 = vld [vmem:[#allocation2 + $0x60] sm:$0xff]  ;;  %v39_v38 = vld [vmem:[#allocation2 + $0x68] sm:$0xff] }
  0x1d   :  { %v69_v37 = vld [vmem:[%s362_s1 + $0x60] sm:$0xff]  ;;  %v70_v40 = vld [vmem:[%s362_s1 + $0x68] sm:$0xff]  ;;  %v40_v41 = vld [vmem:[#allocation2 + $0x70] sm:$0xff] }
  0x1e   :  { %128 = vst [vmem:[#allocation5 + $0x48] sm:$0xff] %v97_v30  ;;  %v100_v39 = vadd.f32 %v69_v37, %v38_v36  ;;  %v71_v42 = vld [vmem:[%s362_s1 + $0x70] sm:$0xff]  ;;  %129 = vst [vmem:[#allocation5 + $0x50] sm:$0xff] %v98_v34  ;;  %v101_v43 = vadd.f32 %v70_v40, %v39_v38  ;;  %v41_v45 = vld [vmem:[#allocation2 + $0x78] sm:$0xff] }
  0x1f   :  { %130 = vst [vmem:[#allocation5 + $0x58] sm:$0xff] %v99_v35  ;;  %v102_v44 = vadd.f32 %v71_v42, %v40_v41  ;;  %v72_v46 = vld [vmem:[%s362_s1 + $0x78] sm:$0xff]  ;;  %v42_v47 = vld [vmem:[#allocation2 + $0x80] sm:$0xff]  ;;  %v43_v50 = vld [vmem:[#allocation2 + $0x88] sm:$0xff] }
  0x20   :  { %131 = vst [vmem:[#allocation5 + $0x60] sm:$0xff] %v100_v39  ;;  %v103_v48 = vadd.f32 %v72_v46, %v41_v45  ;;  %v73_v49 = vld [vmem:[%s362_s1 + $0x80] sm:$0xff]  ;;  %v74_v51 = vld [vmem:[%s362_s1 + $0x88] sm:$0xff]  ;;  %132 = vst [vmem:[#allocation5 + $0x68] sm:$0xff] %v101_v43 }
  0x21   :  { %133 = vst [vmem:[#allocation5 + $0x70] sm:$0xff] %v102_v44  ;;  %v104_v52 = vadd.f32 %v73_v49, %v42_v47  ;;  %v105_v53 = vadd.f32 %v74_v51, %v43_v50  ;;  %v44_v54 = vld [vmem:[#allocation2 + $0x90] sm:$0xff]  ;;  %v45_v56 = vld [vmem:[#allocation2 + $0x98] sm:$0xff]  ;;  %v46_v59 = vld [vmem:[#allocation2 + $0xa0] sm:$0xff] }
  0x22   :  { %v75_v55 = vld [vmem:[%s362_s1 + $0x90] sm:$0xff]  ;;  %134 = vst [vmem:[#allocation5 + $0x78] sm:$0xff] %v103_v48  ;;  %v76_v58 = vld [vmem:[%s362_s1 + $0x98] sm:$0xff]  ;;  %v77_v60 = vld [vmem:[%s362_s1 + $0xa0] sm:$0xff] }
  0x23   :  { %v106_v57 = vadd.f32 %v75_v55, %v44_v54  ;;  %135 = vst [vmem:[#allocation5 + $0x80] sm:$0xff] %v104_v52  ;;  %136 = vst [vmem:[#allocation5 + $0x88] sm:$0xff] %v105_v53  ;;  %v107_v61 = vadd.f32 %v76_v58, %v45_v56  ;;  %v108_v62 = vadd.f32 %v77_v60, %v46_v59  ;;  %v47_v63 = vld [vmem:[#allocation2 + $0xa8] sm:$0xff]  ;;  %v48_v1 = vld [vmem:[#allocation2 + $0xb0] sm:$0xff] }
  0x24   :  { %v78_v0 = vld [vmem:[%s362_s1 + $0xa8] sm:$0xff]  ;;  %v79_v3 = vld [vmem:[%s362_s1 + $0xb0] sm:$0xff]  ;;  %v49_v4 = vld [vmem:[#allocation2 + $0xb8] sm:$0xff] }
  0x25   :  { %137 = vst [vmem:[#allocation5 + $0x90] sm:$0xff] %v106_v57  ;;  %v109_v2 = vadd.f32 %v78_v0, %v47_v63  ;;  %v80_v5 = vld [vmem:[%s362_s1 + $0xb8] sm:$0xff]  ;;  %138 = vst [vmem:[#allocation5 + $0x98] sm:$0xff] %v107_v61  ;;  %v110_v6 = vadd.f32 %v79_v3, %v48_v1  ;;  %v50_v8 = vld [vmem:[#allocation2 + $0xc0] sm:$0xff] }
  0x26   :  { %139 = vst [vmem:[#allocation5 + $0xa0] sm:$0xff] %v108_v62  ;;  %v111_v7 = vadd.f32 %v80_v5, %v49_v4  ;;  %v81_v9 = vld [vmem:[%s362_s1 + $0xc0] sm:$0xff]  ;;  %v51_v10 = vld [vmem:[#allocation2 + $0xc8] sm:$0xff]  ;;  %v52_v13 = vld [vmem:[#allocation2 + $0xd0] sm:$0xff] }
  0x27   :  { %140 = vst [vmem:[#allocation5 + $0xa8] sm:$0xff] %v109_v2  ;;  %v112_v11 = vadd.f32 %v81_v9, %v50_v8  ;;  %v82_v12 = vld [vmem:[%s362_s1 + $0xc8] sm:$0xff]  ;;  %v83_v14 = vld [vmem:[%s362_s1 + $0xd0] sm:$0xff]  ;;  %141 = vst [vmem:[#allocation5 + $0xb0] sm:$0xff] %v110_v6 }
  0x28   :  { %142 = vst [vmem:[#allocation5 + $0xb8] sm:$0xff] %v111_v7  ;;  %v113_v15 = vadd.f32 %v82_v12, %v51_v10  ;;  %v114_v16 = vadd.f32 %v83_v14, %v52_v13  ;;  %v53_v17 = vld [vmem:[#allocation2 + $0xd8] sm:$0xff]  ;;  %v54_v19 = vld [vmem:[#allocation2 + $0xe0] sm:$0xff]  ;;  %v55_v22 = vld [vmem:[#allocation2 + $0xe8] sm:$0xff] }
  0x29   :  { %v84_v18 = vld [vmem:[%s362_s1 + $0xd8] sm:$0xff]  ;;  %143 = vst [vmem:[#allocation5 + $0xc0] sm:$0xff] %v112_v11  ;;  %v85_v21 = vld [vmem:[%s362_s1 + $0xe0] sm:$0xff]  ;;  %v86_v23 = vld [vmem:[%s362_s1 + $0xe8] sm:$0xff] }
  0x2a   :  { %v115_v20 = vadd.f32 %v84_v18, %v53_v17  ;;  %144 = vst [vmem:[#allocation5 + $0xc8] sm:$0xff] %v113_v15  ;;  %145 = vst [vmem:[#allocation5 + $0xd0] sm:$0xff] %v114_v16  ;;  %v116_v24 = vadd.f32 %v85_v21, %v54_v19  ;;  %v117_v25 = vadd.f32 %v86_v23, %v55_v22  ;;  %v56_v26 = vld [vmem:[#allocation2 + $0xf0] sm:$0x1f] }
  0x2b   :  { %v87_v27 = vld [vmem:[%s362_s1 + $0xf0] sm:$0x1f] }
  0x2c   :  { %146 = vst [vmem:[#allocation5 + $0xd8] sm:$0xff] %v115_v20  ;;  %v118_v28 = vadd.f32 %v87_v27, %v56_v26  ;;  %147 = vst [vmem:[#allocation5 + $0xe0] sm:$0xff] %v116_v24 }
  0x2d   :  { %148 = vst [vmem:[#allocation5 + $0xe8] sm:$0xff] %v117_v25 }
  0x2e   :  { %149 = vst [vmem:[#allocation5 + $0xf0] sm:$0x1f] %v118_v28 }
  0x2f   :  { %204 = shalt.err (!%p201_p12)
}
  0x30   :  { %s205_s7 = scalar_lea.hbm %s363_s2, 3968 }
  0x31   :  { %p206_p13 = scmp.ne.s32.totalorder %s363_s2, %s205_s7  ;;  %p209_p0 = scmp.lt.u32.totalorder %s205_s7, %s363_s2 }
  0x33   :  { %p211_p1 = pnand %p209_p0, %p206_p13 }
  0x35   :  { %214 = shalt.err (!%p211_p1)
}
  0x36   :  { %161 = dma.vmem_to_hbm [thread:$0]  %s156_s26, 3968, %s363_s2, [#allocation4], %s220_s19, %s220_s19, %s221_s20  }
  0x37   :  { %217 = dma.done.wait [#allocation4], 3968  }
  0x38   :  { %218 = vsyncadd [#allocation4], 4294963328 }
  0x39   :  { %165 = vsyncpa [#allocation3], 1 }
  0x3a   :  { %166 = vsyncpa [#allocation4], 1 }

</bundles_post_ra>
